<compile_context>
chip_gen: v5e
topology: v5e:2x2
jax: 0.10.0
libtpu: 0.0.40
codegen_flags: <defaults>
</compile_context>

<pallas_src>
import math

import jax
import jax.numpy as jnp
from jax import lax
from jax.experimental import pallas as pl
from jax.experimental.pallas import tpu as pltpu


def _ffn_kernel(x_ref, w1_ref, b1_ref, w2_ref, b2_ref, o_ref, acc_ref):
    # x_ref:  (tm, Dm)   row tile of flattened (B*S, d_model) input
    # w1_ref: (tf, Dm)   tile of linear_1.weight  (d_ff, d_model)
    # b1_ref: (1, tf)    tile of linear_1.bias
    # w2_ref: (Dm, tf)   tile of linear_2.weight  (d_model, d_ff)
    # b2_ref: (1, Dm)    linear_2.bias
    # o_ref:  (tm, Dm)   output tile (resident across the d_ff reduction axis)
    # acc_ref:(tm, Dm)   f32 accumulator scratch
    f = pl.program_id(1)

    @pl.when(f == 0)
    def _():
        acc_ref[...] = jnp.zeros_like(acc_ref)

    # h = relu(x @ W1_tile^T + b1_tile)   -- contract last dims (trans_b matmul)
    # Optional (v5e/v6e): cast x/w1/w2 to bf16 here to halve input DMA traffic;
    # kept f32 for tight numerical agreement with the reference.
    h = lax.dot_general(
        x_ref[...], w1_ref[...],
        dimension_numbers=(((1,), (1,)), ((), ())),
        preferred_element_type=jnp.float32,
    )
    h = jnp.maximum(h + b1_ref[...], 0.0)
    # TODO(synk): nn.Dropout is stochastic in train mode; eval-mode identity here.

    # acc += h @ W2_tile^T   (partial over this d_ff tile)
    acc_ref[...] += lax.dot_general(
        h, w2_ref[...],
        dimension_numbers=(((1,), (1,)), ((), ())),
        preferred_element_type=jnp.float32,
    )

    @pl.when(f == pl.num_programs(1) - 1)
    def _():
        o_ref[...] = (acc_ref[...] + b2_ref[...]).astype(o_ref.dtype)


def _pick_tile(total, target, align):
    """Largest multiple of `align` <= target that divides `total`; else `total`."""
    t = (min(target, total) // align) * align
    while t >= align:
        if total % t == 0:
            return t
        t -= align
    return total


def ffn_forward(x, w1, b1, w2, b2, *, tm=None, tf=None):
    """x: (B, S, d_model).
    w1: (d_ff, d_model), b1: (d_ff,), w2: (d_model, d_ff), b2: (d_model,)
    — PyTorch nn.Linear layouts, consumed directly (no transpose in the wrapper).
    Returns (B, S, d_model) float32."""
    B, S, Dm = x.shape
    Dff = w1.shape[0]
    M = B * S

    x2 = x.reshape(M, Dm)          # free reshape (row-major contiguous)
    b1_2 = b1.reshape(1, Dff)
    b2_2 = b2.reshape(1, Dm)

    # Tile sizes: rows aligned to 8 sublanes, d_ff tiles aligned to 128 lanes.
    # (On v7x halve the targets if Dm/Dff are large; 64 MiB VMEM.)
    if tm is None:
        tm = _pick_tile(M, 256, 8)
    if tf is None:
        tf = _pick_tile(Dff, 512, 128)
    assert M % tm == 0 and Dff % tf == 0

    grid = (M // tm, Dff // tf)

    flops = 4 * M * Dm * Dff  # two matmuls, 2*M*Dm*Dff each
    bytes_accessed = 4 * (x2.size + w1.size + b1.size + w2.size + b2.size + M * Dm)

    out = pl.pallas_call(
        _ffn_kernel,
        out_shape=jax.ShapeDtypeStruct((M, Dm), jnp.float32),
        grid_spec=pltpu.PrefetchScalarGridSpec(
            num_scalar_prefetch=0,
            grid=grid,
            in_specs=[
                pl.BlockSpec((tm, Dm), lambda m, f: (m, 0)),   # x rows (invariant over f)
                pl.BlockSpec((tf, Dm), lambda m, f: (f, 0)),   # W1 tile
                pl.BlockSpec((1, tf), lambda m, f: (0, f)),    # b1 tile
                pl.BlockSpec((Dm, tf), lambda m, f: (0, f)),   # W2 tile
                pl.BlockSpec((1, Dm), lambda m, f: (0, 0)),    # b2 (invariant)
            ],
            out_specs=pl.BlockSpec((tm, Dm), lambda m, f: (m, 0)),
            scratch_shapes=[pltpu.VMEM((tm, Dm), jnp.float32)],
        ),
        compiler_params=pltpu.CompilerParams(
            dimension_semantics=("parallel", "arbitrary"),
        ),
        cost_estimate=pl.CostEstimate(
            flops=flops, transcendentals=0, bytes_accessed=bytes_accessed
        ),
    )(x2, w1, b1_2, w2, b2_2)
    return out.reshape(B, S, Dm)


if __name__ == "__main__":
    # Small shapes consistent with the module; d_model/d_ff kept lane-dense
    # (multiples of 128) per the performance guidance.
    batch, seq_len = 2, 8
    d_model, d_ff = 128, 256
    dropout = 0.1  # unused at inference (identity)

    key = jax.random.PRNGKey(0)
    k_x, k_w1, k_b1, k_w2, k_b2 = jax.random.split(key, 5)

    x = jax.random.normal(k_x, (batch, seq_len, d_model), dtype=jnp.float32)
    # nn.Linear(d_model, d_ff): weight (d_ff, d_model), bias (d_ff,)
    w1 = jax.random.normal(k_w1, (d_ff, d_model), dtype=jnp.float32) / math.sqrt(d_model)
    b1 = jax.random.normal(k_b1, (d_ff,), dtype=jnp.float32) * 0.01
    # nn.Linear(d_ff, d_model): weight (d_model, d_ff), bias (d_model,)
    w2 = jax.random.normal(k_w2, (d_model, d_ff), dtype=jnp.float32) / math.sqrt(d_ff)
    b2 = jax.random.normal(k_b2, (d_model,), dtype=jnp.float32) * 0.01

    # Small explicit tiles so both grid axes (rows, d_ff reduction) are exercised.
    out = ffn_forward(x, w1, b1, w2, b2, tm=8, tf=128)
    out = jax.block_until_ready(out)

    # Reference in plain JAX (eval mode: dropout = identity).
    h = jnp.maximum(jnp.einsum("bsd,fd->bsf", x, w1) + b1, 0.0)
    ref = jnp.einsum("bsf,df->bsd", h, w2) + b2

    assert out.shape == (batch, seq_len, d_model)
    assert jnp.allclose(out, ref, atol=1e-4, rtol=1e-4)

    print("KERNEL_OK")
</pallas_src>

<mosaic_0001>
module attributes {stable_mosaic.version = 11 : i64} {
  func.func @_ffn_kernel(%arg0: i32, %arg1: i32, %arg2: memref<8x128xf32, #tpu.memory_space<vmem>>, %arg3: memref<128x128xf32, #tpu.memory_space<vmem>>, %arg4: memref<1x128xf32, #tpu.memory_space<vmem>>, %arg5: memref<128x128xf32, #tpu.memory_space<vmem>>, %arg6: memref<1x128xf32, #tpu.memory_space<vmem>>, %arg7: memref<8x128xf32, #tpu.memory_space<vmem>>, %arg8: memref<8x128xf32, #tpu.memory_space<vmem>>) attributes {dimension_semantics = [#tpu.dimension_semantics<parallel>, #tpu.dimension_semantics<arbitrary>], iteration_bounds = array<i64: 2, 2>, scalar_prefetch = 0 : i64, scratch_operands = 1 : i64, tpu.core_type = #tpu.core_type<tc>, window_params = [{transform_indices = @transform_0, window_bounds = array<i64: 8, 128>}, {transform_indices = @transform_1, window_bounds = array<i64: 128, 128>}, {transform_indices = @transform_2, window_bounds = array<i64: 1, 128>}, {transform_indices = @transform_3, window_bounds = array<i64: 128, 128>}, {pipeline_mode = #tpu.pipeline_mode<synchronous>, transform_indices = @transform_4, window_bounds = array<i64: 1, 128>}, {transform_indices = @transform_5, window_bounds = array<i64: 8, 128>}]} {
    %c0_i32 = arith.constant 0 : i32
    %0 = arith.cmpi eq, %arg1, %c0_i32 : i32
    %1 = arith.extui %0 : i1 to i32
    %c0_i32_0 = arith.constant 0 : i32
    %2 = arith.cmpi ne, %1, %c0_i32_0 : i32
    scf.if %2 {
      %cst_15 = arith.constant 0.000000e+00 : f32
      %19 = vector.broadcast %cst_15 : f32 to vector<8x128xf32>
      %c0_16 = arith.constant 0 : index
      %c0_17 = arith.constant 0 : index
      %20 = vector.load %arg8[%c0_16, %c0_17] : memref<8x128xf32, #tpu.memory_space<vmem>>, vector<8x128xf32>
      tpu.vector_store %arg8[%c0_16, %c0_17], %19 {strides = array<i32>} : memref<8x128xf32, #tpu.memory_space<vmem>>, vector<8x128xf32>,
    } else {
    }
    %c0 = arith.constant 0 : index
    %c0_1 = arith.constant 0 : index
    %3 = vector.load %arg2[%c0, %c0_1] : memref<8x128xf32, #tpu.memory_space<vmem>>, vector<8x128xf32>
    %c0_2 = arith.constant 0 : index
    %c0_3 = arith.constant 0 : index
    %4 = vector.load %arg3[%c0_2, %c0_3] : memref<128x128xf32, #tpu.memory_space<vmem>>, vector<128x128xf32>
    %cst = arith.constant dense<0.000000e+00> : vector<8x128xf32>
    %5 = tpu.matmul %3, %4, %cst {dimension_numbers = #tpu.dot_dimension_numbers<[1], [1], [0], [0], [0, 0, 1, 0], [], []>} : vector<8x128xf32>, vector<128x128xf32>, vector<8x128xf32> -> vector<8x128xf32>
    %c0_4 = arith.constant 0 : index
    %c0_5 = arith.constant 0 : index
    %6 = vector.load %arg4[%c0_4, %c0_5] : memref<1x128xf32, #tpu.memory_space<vmem>>, vector<1x128xf32>
    %7 = vector.broadcast %6 : vector<1x128xf32> to vector<8x128xf32>
    %8 = arith.addf %5, %7 : vector<8x128xf32>
    %cst_6 = arith.constant 0.000000e+00 : f32
    %9 = vector.broadcast %cst_6 : f32 to vector<8x128xf32>
    %10 = arith.maximumf %8, %9 : vector<8x128xf32>
    %c0_7 = arith.constant 0 : index
    %c0_8 = arith.constant 0 : index
    %11 = vector.load %arg8[%c0_7, %c0_8] : memref<8x128xf32, #tpu.memory_space<vmem>>, vector<8x128xf32>
    %c0_9 = arith.constant 0 : index
    %c0_10 = arith.constant 0 : index
    %12 = vector.load %arg5[%c0_9, %c0_10] : memref<128x128xf32, #tpu.memory_space<vmem>>, vector<128x128xf32>
    %cst_11 = arith.constant dense<0.000000e+00> : vector<8x128xf32>
    %13 = tpu.matmul %10, %12, %cst_11 {dimension_numbers = #tpu.dot_dimension_numbers<[1], [1], [0], [0], [0, 0, 1, 0], [], []>} : vector<8x128xf32>, vector<128x128xf32>, vector<8x128xf32> -> vector<8x128xf32>
    %14 = arith.addf %11, %13 : vector<8x128xf32>
    %c0_12 = arith.constant 0 : index
    %c0_13 = arith.constant 0 : index
    %15 = vector.load %arg8[%c0_12, %c0_13] : memref<8x128xf32, #tpu.memory_space<vmem>>, vector<8x128xf32>
    tpu.vector_store %arg8[%c0_12, %c0_13], %14 {strides = array<i32>} : memref<8x128xf32, #tpu.memory_space<vmem>>, vector<8x128xf32>,
    %c1_i32 = arith.constant 1 : i32
    %16 = arith.cmpi eq, %arg1, %c1_i32 : i32
    %17 = arith.extui %16 : i1 to i32
    %c0_i32_14 = arith.constant 0 : i32
    %18 = arith.cmpi ne, %17, %c0_i32_14 : i32
    scf.if %18 {
      %c0_15 = arith.constant 0 : index
      %c0_16 = arith.constant 0 : index
      %19 = vector.load %arg8[%c0_15, %c0_16] : memref<8x128xf32, #tpu.memory_space<vmem>>, vector<8x128xf32>
      %c0_17 = arith.constant 0 : index
      %c0_18 = arith.constant 0 : index
      %20 = vector.load %arg6[%c0_17, %c0_18] : memref<1x128xf32, #tpu.memory_space<vmem>>, vector<1x128xf32>
      %21 = vector.broadcast %20 : vector<1x128xf32> to vector<8x128xf32>
      %22 = arith.addf %19, %21 : vector<8x128xf32>
      %c0_19 = arith.constant 0 : index
      %c0_20 = arith.constant 0 : index
      %23 = vector.load %arg7[%c0_19, %c0_20] : memref<8x128xf32, #tpu.memory_space<vmem>>, vector<8x128xf32>
      tpu.vector_store %arg7[%c0_19, %c0_20], %22 {strides = array<i32>} : memref<8x128xf32, #tpu.memory_space<vmem>>, vector<8x128xf32>,
    } else {
    }
    return
  }
  func.func @transform_0(%arg0: i32, %arg1: i32) -> (i32, i32) {
    %c0_i32 = arith.constant 0 : i32
    %c0_i32_0 = arith.constant 0 : i32
    return %arg0, %c0_i32 : i32, i32
  }
  func.func @transform_1(%arg0: i32, %arg1: i32) -> (i32, i32) {
    %c0_i32 = arith.constant 0 : i32
    %c0_i32_0 = arith.constant 0 : i32
    return %arg1, %c0_i32 : i32, i32
  }
  func.func @transform_2(%arg0: i32, %arg1: i32) -> (i32, i32) {
    %c0_i32 = arith.constant 0 : i32
    %c0_i32_0 = arith.constant 0 : i32
    return %c0_i32, %arg1 : i32, i32
  }
  func.func @transform_3(%arg0: i32, %arg1: i32) -> (i32, i32) {
    %c0_i32 = arith.constant 0 : i32
    %c0_i32_0 = arith.constant 0 : i32
    return %c0_i32, %arg1 : i32, i32
  }
  func.func @transform_4(%arg0: i32, %arg1: i32) -> (i32, i32) {
    %c0_i32 = arith.constant 0 : i32
    %c0_i32_0 = arith.constant 0 : i32
    %c0_i32_1 = arith.constant 0 : i32
    return %c0_i32, %c0_i32_0 : i32, i32
  }
  func.func @transform_5(%arg0: i32, %arg1: i32) -> (i32, i32) {
    %c0_i32 = arith.constant 0 : i32
    %c0_i32_0 = arith.constant 0 : i32
    return %arg0, %c0_i32 : i32, i32
  }
}

</mosaic_0001>

<bundles_post_ra>
// kernel: tpu_custom_call.1
= control target key start
LH: loop header
LB: loop body
LE: loop exit
PB: predicated region body
PF: predicated region fallthrough
CT: control target
= control target key end

     0   :  { %s1372_s0 = inlined_call_operand.hbm [shape: f32[16,128], index: 0, kind: input, shape index: {}]   ;;  %s1373_s1 = inlined_call_operand.hbm [shape: f32[256,128], index: 1, kind: input, shape index: {}]   ;;  %s1374_s2 = inlined_call_operand.hbm [shape: f32[1,256], index: 2, kind: input, shape index: {}]   ;;  %s1375_s3 = inlined_call_operand.hbm [shape: f32[128,256], index: 3, kind: input, shape index: {}]   ;;  %s1376_s4 = inlined_call_operand.vmem [shape: f32[1,128], index: 4, kind: input, shape index: {}]   ;;  %s1377_s5 = inlined_call_operand.hbm [shape: f32[16,128], index: 5, kind: output, shape index: {}]  }
   0x1   :  { %1391 = sst [smem:[#allocation27_spill]] %s1372_s0 }
   0x2   :  { %1392 = sst [smem:[#allocation28_spill]] %s1373_s1 }
   0x3   :  { %1393 = sst [smem:[#allocation29_spill]] %s1376_s4 }
   0x4   :  { %1394 = sst [smem:[#allocation30_spill]] %s1377_s5 }
   0x5   :  { %10 = vsyncpa [#allocation4], 0 }
   0x6   :  { %12 = vsyncpa [#allocation4 + $0x1], 0 }
   0x7   :  { %13 = vsyncpa [#allocation7], 0 }
   0x8   :  { %15 = vsyncpa [#allocation7 + $0x1], 0 }
   0x9   :  { %16 = vsyncpa [#allocation10], 0 }
   0xa   :  { %18 = vsyncpa [#allocation10 + $0x1], 0 }
   0xb   :  { %19 = vsyncpa [#allocation5], 0 }
   0xc   :  { %21 = vsyncpa [#allocation5 + $0x1], 0  ;;  %s1058_s18 = smov 0   ;;  %s1060_s19 = smov 0  }
   0xd   :  { %s1062_s20 = smov 0   ;;  %s1064_s21 = smov 0  }
   0xe   :  { %s1066_s22 = smov 0   ;;  %s1068_s23 = smov 0  }
   0xf   :  { %s1070_s24 = smov 0   ;;  %s1072_s25 = smov 0  }
  0x10   :  { %s1074_s26 = smov 0   ;;  %s1076_s27 = smov 0  }
  0x11   :  { %s1078_s28 = smov 0  }
  0x12 LB: > { %1395 = sst [smem:[#allocation16_spill]] %s990_s20  ;;  %p54_p0 = scmp.eq.s32.totalorder %s1022_s28, 0  ;;  %s1022_s28 = sphi %s1078_s28, %s27_s28   ;;  %s1018_s27 = sphi %s1076_s27, %s1432_s27   ;;  %s1014_s26 = sphi %s1074_s26, %s1439_s26   ;;  %s1010_s25 = sphi %s1072_s25, %s1438_s25   ;;  %s1006_s24 = sphi %s1070_s24, %s1437_s24   ;;  %s1002_s23 = sphi %s1068_s23, %s1429_s23   ;;  %s998_s22 = sphi %s1066_s22, %s1436_s22   ;;  %s994_s21 = sphi %s1064_s21, %s1435_s21   ;;  %s990_s20 = sphi %s1062_s20, %s1427_s20   ;;  %s986_s19 = sphi %s1060_s19, %s1434_s19   ;;  %s982_s18 = sphi %s1058_s18, %s1433_s18  }
  0x13   : > { %1396 = sst [smem:[#allocation17_spill]] %s994_s21  ;;  %p79_p1 = scmp.ne.s32.totalorder %s990_s20, %s986_s19 }
  0x14   : > { %1397 = sst [smem:[#allocation18_spill]] %s1002_s23  ;;  %p1382_p2 = scmp.lt.s32.totalorder %s1022_s28, 4 }
  0x15   : > { %1398 = sst [smem:[#allocation19_spill]] %s1010_s25  ;;  %s230_s29 = sand.u32 1, %s1022_s28  }
  0x16   : > { %1399 = sst [smem:[#allocation20_spill]] %s1018_s27  ;;  %p81_p3 = por %p79_p1, %p54_p0 }
  0x17   : > { %1400 = sst [smem:[#allocation21_spill]] %s1022_s28  ;;  %s1121_s30 = sand.u32 1, %s990_s20  }
  0x18   : > { %s648_s6 = sshll.u32 %s1014_s26, 7  ;;  %s632_s7 = sshll.u32 %s1121_s30, 7 }
  0x19   : > { %s1401_s1 = sld [smem:[#allocation28_spill]]  ;;  %s234_s12 = scalar_lea.vmem [#allocation6], %s632_s7 }
  0x1a   : > { %s242_s13 = sshll.u32 %s234_s12, 4  ;;  %p1130_p4 = pnand %p1382_p2, %p81_p3  ;;  %s243_s13 = int_to_ptr.vmem [resolvable:$true] %s242_s13 }
  0x1b   : > { %s1134_s15 = scalar_lea.sflag [#allocation7], %s230_s29  ;;  %s1378_s16 = smov 128  }
  0x1c   : > { %s1379_s17 = smov 8   ;;  %p637_p5 = scmp.ge.s32.totalorder %s1022_s28, 1 }
  0x1d   : > { %s1144_s29 = scalar_lea.vmem [#allocation9], %s632_s7  ;;  %p288_p6 = scmp.lt.s32.totalorder %s1022_s28, 5 }
  0x1e   : > { %s36_s12 = sadd.s32 1, %s1014_s26  ;;  %s39_s7 = sadd.s32 1, %s1018_s27 }
  0x1f   : > { %s239_s10 = scalar_lea.hbm %s1401_s1, %s648_s6  ;;  %s72_s6 = sadd.s32 1, %s990_s20 }
  0x20   : > { %s240_s11 = sshll.u32 %s239_s10, 4  ;;  %p1148_p7 = pnand %p637_p5, %p288_p6  ;;  %s241_s11 = int_to_ptr.hbm [resolvable:$true] %s240_s11 }
  0x21   : > { %665 = dma.hbm_to_vmem [thread:$0]  (!%p1130_p4), %s241_s11, 2048, %s243_s13, %s1134_s15, %s1378_s16, %s1378_s16, %s1379_s17  }
  0x22   : > { %s1153_s10 = sadd.s32 4294967295, %s1022_s28   ;;  %s627_s11 = sadd.s32 4294967294, %s1022_s28  }
  0x23   : > { %p37_p8 = scmp.ge.s32.totalorder %s36_s12, 2  ;;  %s46_s13 = sadd.s32 1, %s1002_s23 }
  0x24   : > { %p53_p9 = scmp.ne.s32.totalorder %s1002_s23, %s998_s22  ;;  %p59_p11 = scmp.ne.s32.totalorder %s998_s22, %s994_s21 }
  0x25   : > { %s1441_s12 = smov (%p37_p8, %s36_s12), 0  ;;  %s1443_s7 = smov (!%p37_p8, %s39_s7), %s1018_s27 }
  0x26   : > { %1404 = sst [smem:[#allocation22_spill]] %s1441_s12  ;;  %p1169_p10 = por %p54_p0, %p53_p9 }
  0x27   : > { %p41_p12 = scmp.ge.s32.totalorder %s1443_s7, 2  ;;  %p60_p13 = scmp.eq.s32.totalorder %s1153_s10, 0 }
  0x28   : > { %s69_s17 = ssub.s32 %s1014_s26, %s1441_s12  ;;  %p85_p1 = scmp.ne.s32.totalorder %s986_s19, %s982_s18 }
  0x29   : > { %s1445_s7 = smov (%p41_p12, %s1443_s7), 0  ;;  %p1185_p3 = por %p60_p13, %p59_p11 }
  0x2a   : > { %1406 = sst [smem:[#allocation23_spill]] %s1445_s7  ;;  %p70_p0 = scmp.eq.s32.totalorder %s69_s17, 0 }
  0x2b   : > { %s43_s1 = ssub.s32 %s1018_s27, %s1445_s7  ;;  %p1191_p5 = por %p85_p1, %p60_p13 }
  0x2c   : > { %p44_p6 = scmp.eq.s32.totalorder %s43_s1, 0  ;;  %p182_p8 = scmp.eq.s32.totalorder %s1153_s10, 3 }
  0x2d   : > { %s1197_s18 = scalar_select %p70_p0, %s990_s20, %s72_s6  }
  0x2e   : > { %s1200_s12 = scalar_select %p44_p6, %s1002_s23, %s46_s13  }
  0x2f   : > { %1409 = sst [smem:[#allocation24_spill]] %s1197_s18  ;;  %p1205_p12 = por %p182_p8, %p53_p9 }
  0x30   : > { %1410 = sst [smem:[#allocation25_spill]] %s1200_s12  ;;  %p188_p2 = scmp.eq.s32.totalorder %s627_s11, 3 }
  0x31   : > { %s211_s17 = sand.u32 1, %s1002_s23   ;;  %s631_s7 = sshll.u32 %s1018_s27, 3 }
  0x32   : > { %p1214_p13 = por %p188_p2, %p59_p11  ;;  %s630_s4 = sshll.u32 %s211_s17, 3 }
  0x33   : > { %s1414_s0 = sld [smem:[#allocation27_spill]]  ;;  %s215_s11 = scalar_lea.vmem [#allocation3], %s630_s4 }
  0x34   : > { %s1412_s1 = scalar_select %p1214_p13, 1, 0 }
  0x35   : > { %s223_s23 = sshll.u32 %s215_s11, 4  ;;  %p1415_p9 = scmp.lt.s32.totalorder %s1022_s28, 4  ;;  %s224_s23 = int_to_ptr.vmem [resolvable:$true] %s223_s23 }
  0x36   : > { %1413 = sst [smem:[#allocation26_spill]] %s1412_s1  ;;  %s258_s1 = scalar_lea.hbm %s1374_s2, %s1014_s26 }
  0x37   : > { %p660_p2 = pnand %p1415_p9, %p1169_p10  ;;  %s260_s21 = sshll.u32 %s258_s1, 4  ;;  %s261_s21 = int_to_ptr.hbm [resolvable:$true] %s260_s21 }
  0x38   : > { %s212_s18 = scalar_lea.sflag [#allocation4], %s211_s17  ;;  %s636_s4 = sshll.u32 %s1014_s26, 3 }
  0x39   : > { %s219_s13 = scalar_lea.hbm %s1414_s0, %s631_s7  ;;  %s255_s7 = scalar_lea.vmem [#allocation8], %s1121_s30 }
  0x3a   : > { %s221_s12 = sshll.u32 %s219_s13, 4  ;;  %s262_s6 = sshll.u32 %s255_s7, 4  ;;  %s222_s12 = int_to_ptr.hbm [resolvable:$true] %s221_s12  ;;  %s263_s6 = int_to_ptr.vmem [resolvable:$true] %s262_s6 }
  0x3b   : > { %662 = dma.hbm_to_vmem [thread:$0]  (!%p660_p2), %s222_s12, 128, %s224_s23, %s212_s18  }
  0x3c   : > { %s1416_s13 = sshll.u32 %s1144_s29, 4  ;;  %s277_s0 = scalar_lea.hbm %s1375_s3, %s636_s4  ;;  %s281_s13 = int_to_ptr.vmem [resolvable:$true] %s1416_s13 }
  0x3d   : > { %668 = dma.hbm_to_vmem [thread:$0]  (!%p1130_p4), %s261_s21, 16, %s263_s6, %s1134_s15  }
  0x3e   : > { %s278_s28 = sshll.u32 %s277_s0, 4  ;;  %s270_s20 = scalar_lea.sflag [#allocation10], %s1121_s30  ;;  %s279_s28 = int_to_ptr.hbm [resolvable:$true] %s278_s28 }
  0x3f   : > { %s1026_s27 = smov 256   ;;  %s1417_s17 = smov 8  }
  0x40   : > { %s1418_s23 = smov 128   ;;  %292 = sbr.rel (%p1148_p7) target bundleno = 440 (0x1b8), region = 40 }
  0x41   : > { %671 = dma.hbm_to_vmem [thread:$0]  (!%p1130_p4), %s279_s28, 2048, %s281_s13, %s270_s20, %s1026_s27, %s1418_s23, %s1417_s17  }
  0x42   : > { %s1247_s29 = sand.u32 (!%p1148_p7), 1, %s998_s22  }
  0x43   : > { %s638_s21 = sshll.u32 (!%p1148_p7), %s1247_s29, 3  ;;  %s295_s15 = scalar_lea.sflag (!%p1148_p7), [#allocation4], %s1247_s29 }
  0x44   : > { %s1251_s12 = scalar_lea.vmem (!%p1148_p7), [#allocation3], %s638_s21 }
  0x45   : > { %965 = dma.done.wait (%p1185_p3), %s295_s15, 128  }
  0x46   : > { %967 = vsyncadd (%p1185_p3), %s295_s15, 4294967168  ;;  %s304_s0 = sand.u32 1, %s1153_s10   ;;  %s1259_s28 = sand.u32 1, %s986_s19  }
  0x47   : > { %s639_s30 = sshll.u32 %s1259_s28, 7  ;;  %s305_s14 = scalar_lea.sflag [#allocation7], %s304_s0 }
  0x48   : > { %s1262_s9 = scalar_lea.vmem [#allocation6], %s639_s30 }
  0x49   : > { %969 = dma.done.wait (%p1191_p5), %s305_s14, 2064  }
  0x4a   : > { %971 = vsyncadd (%p1191_p5), %s305_s14, 4294965232  ;;  %s317_s8 = scalar_lea.vmem [#allocation8], %s1259_s28  ;;  %s324_s1 = scalar_lea.sflag [#allocation10], %s1259_s28 }
  0x4b   : > { %s1270_s18 = scalar_lea.vmem [#allocation9], %s639_s30 }
  0x4c   : > { %973 = dma.done.wait (%p1191_p5), %s324_s1, 2048  }
  0x4d   : > { %975 = vsyncadd (%p1191_p5), %s324_s1, 4294965248  ;;  %s1276_s10 = scalar_lea.vmem [#allocation11], %s638_s21  ;;  %p642_p4 = scmp.ne.s32.totalorder %s1006_s24, 0 }
  0x4f   : > { %373 = sbr.rel (%p642_p4) target bundleno = 86 (0x56), region = 60 }
  0x54   : > { %v1027_v0 = vmov 0.0  }
  0x55   : > { %374 = vst [vmem:[#allocation2] sm:$0xff] %v1027_v0 }
  0x56 PF: > { %v391_v1 = vld [vmem:[%s1262_s9 + $0x78] sm:$0xff]  ;;  %v390_v2 = vld [vmem:[%s1262_s9 + $0x70] sm:$0xff]  ;;  %v389_v3 = vld [vmem:[%s1262_s9 + $0x68] sm:$0xff]  ;;  %p643_p7 = scmp.ne.s32.totalorder %s1006_s24, 1 }
  0x57   : > { %396 = vmatpush.xpose.msra.mxu0 %v391_v1  ;;  %v388_v4 = vld [vmem:[%s1262_s9 + $0x60] sm:$0xff]  ;;  %v387_v5 = vld [vmem:[%s1262_s9 + $0x58] sm:$0xff]  ;;  %v386_v6 = vld [vmem:[%s1262_s9 + $0x50] sm:$0xff]  ;;  %s1419_s6 = sld [smem:[#allocation29_spill]] (!%p643_p7) }
  0x58   : > { %v385_v7 = vld [vmem:[%s1262_s9 + $0x48] sm:$0xff]  ;;  %v384_v8 = vld [vmem:[%s1262_s9 + $0x40] sm:$0xff]  ;;  %v383_v9 = vld [vmem:[%s1262_s9 + $0x38] sm:$0xff] }
  0x59   : > { %v433_v10 = vld [vmem:[%s1270_s18 + $0x78] sm:$0xff]  ;;  %v382_v11 = vld [vmem:[%s1262_s9 + $0x30] sm:$0xff]  ;;  %v381_v13 = vld [vmem:[%s1262_s9 + $0x28] sm:$0xff] }
  0x5a   : > { %434 = vmatpush.xpose.msra.mxu1 %v433_v10  ;;  %v432_v12 = vld [vmem:[%s1270_s18 + $0x70] sm:$0xff]  ;;  %v431_v14 = vld [vmem:[%s1270_s18 + $0x68] sm:$0xff]  ;;  %v380_v15 = vld [vmem:[%s1262_s9 + $0x20] sm:$0xff] }
  0x5b   : > { %397 = vmatpush.xpose.msra.mxu0 %v390_v2  ;;  %v430_v16 = vld [vmem:[%s1270_s18 + $0x60] sm:$0xff]  ;;  %v379_v17 = vld [vmem:[%s1262_s9 + $0x18] sm:$0xff]  ;;  %v378_v19 = vld [vmem:[%s1262_s9 + $0x10] sm:$0xff] }
  0x5c   : > { %v429_v18 = vld [vmem:[%s1270_s18 + $0x58] sm:$0xff]  ;;  %v428_v20 = vld [vmem:[%s1270_s18 + $0x50] sm:$0xff]  ;;  %v377_v21 = vld [vmem:[%s1262_s9 + $0x8] sm:$0xff] }
  0x5d   : > { %v427_v22 = vld [vmem:[%s1270_s18 + $0x48] sm:$0xff]  ;;  %v376_v23 = vld [vmem:[%s1262_s9] sm:$0xff]  ;;  %v424_v27 = vld [vmem:[%s1270_s18 + $0x30] sm:$0xff] }
  0x5e   : > { %435 = vmatpush.xpose.msra.mxu1 %v432_v12  ;;  %v426_v24 = vld [vmem:[%s1270_s18 + $0x40] sm:$0xff]  ;;  %v375_v25 = vld [vmem:[%s1251_s12] sm:$0xff] }
  0x5f   : > { %398 = vmatpush.xpose.msra.mxu0 %v389_v3  ;;  %v425_v26 = vld [vmem:[%s1270_s18 + $0x38] sm:$0xff]  ;;  %v423_v28 = vld [vmem:[%s1270_s18 + $0x28] sm:$0xff]  ;;  %v422_v29 = vld [vmem:[%s1270_s18 + $0x20] sm:$0xff] }
  0x60   : > { %v421_v30 = vld [vmem:[%s1270_s18 + $0x18] sm:$0xff]  ;;  %v420_v31 = vld [vmem:[%s1270_s18 + $0x10] sm:$0xff]  ;;  %v419_v32 = vld [vmem:[%s1270_s18 + $0x8] sm:$0xff] }
  0x61   : > { %v418_v33 = vld [vmem:[%s1270_s18] sm:$0xff] }
  0x62   : > { %436 = vmatpush.xpose.msra.mxu1 %v431_v14  ;;  %v770_v34 = vld [vmem:[%s317_s8] ss:$0 sm:$0xff] }
  0x63   : > { %399 = vmatpush.xpose.msra.mxu0 %v388_v4  ;;  %v417_v38 = vld [vmem:[#allocation2] sm:$0xff] }
  0x66   : > { %437 = vmatpush.xpose.msra.mxu1 %v430_v16 }
  0x67   : > { %400 = vmatpush.xpose.msra.mxu0 %v387_v5 }
  0x6a   : > { %438 = vmatpush.xpose.msra.mxu1 %v429_v18 }
  0x6b   : > { %401 = vmatpush.xpose.msra.mxu0 %v386_v6 }
  0x6e   : > { %439 = vmatpush.xpose.msra.mxu1 %v428_v20 }
  0x6f   : > { %402 = vmatpush.xpose.msra.mxu0 %v385_v7 }
  0x72   : > { %440 = vmatpush.xpose.msra.mxu1 %v427_v22 }
  0x73   : > { %403 = vmatpush.xpose.msra.mxu0 %v384_v8 }
  0x76   : > { %441 = vmatpush.xpose.msra.mxu1 %v426_v24 }
  0x77   : > { %404 = vmatpush.xpose.msra.mxu0 %v383_v9 }
  0x7a   : > { %442 = vmatpush.xpose.msra.mxu1 %v425_v26 }
  0x7b   : > { %405 = vmatpush.xpose.msra.mxu0 %v382_v11 }
  0x7e   : > { %443 = vmatpush.xpose.msra.mxu1 %v424_v27 }
  0x7f   : > { %406 = vmatpush.xpose.msra.mxu0 %v381_v13 }
  0x82   : > { %444 = vmatpush.xpose.msra.mxu1 %v423_v28 }
  0x83   : > { %407 = vmatpush.xpose.msra.mxu0 %v380_v15 }
  0x86   : > { %445 = vmatpush.xpose.msra.mxu1 %v422_v29 }
  0x87   : > { %408 = vmatpush.xpose.msra.mxu0 %v379_v17 }
  0x8a   : > { %446 = vmatpush.xpose.msra.mxu1 %v421_v30 }
  0x8b   : > { %409 = vmatpush.xpose.msra.mxu0 %v378_v19 }
  0x8e   : > { %447 = vmatpush.xpose.msra.mxu1 %v420_v31 }
  0x8f   : > { %410 = vmatpush.xpose.msra.mxu0 %v377_v21 }
  0x92   : > { %448 = vmatpush.xpose.msra.mxu1 %v419_v32 }
  0x93   : > { %411 = vmatpush.xpose.msra.mxu0 %v376_v23 }
  0x96   : > { %412 = vmatmul.f32.vlgmr.msra.gmra.mxu0 %v375_v25  ;;  %449 = vmatpush.xpose.msra.mxu1 %v418_v33 }
 0x113   : > { %v413_v35 = vpop.f32.mrf.mxu0 }
 0x114   : > { %v414_v36 = vadd.f32 %v770_v34, %v413_v35 }
 0x116   : > { %v416_v37 = vmax.f32 %v414_v36, 0.0 }
 0x118   : > { %450 = vmatmul.f32.vlgmr.msra.gmra.mxu1 %v416_v37 }
 0x194   : > { %459 = sbr.rel (%p643_p7) target bundleno = 419 (0x1a3), region = 64 }
 0x195   : > { %v451_v39 = vpop.f32.mrf.mxu1 }
 0x196   : > { %v454_v40 = vadd.f32 %v451_v39, %v417_v38 }
 0x198   : > { %455 = vst [vmem:[#allocation2] sm:$0xff] %v454_v40 }
 0x199   : > { %v771_v42 = vld [vmem:[%s1419_s6] ss:$0 sm:$0xff] }
 0x19f   : > { %v460_v41 = vld [vmem:[#allocation2] sm:$0xff] }
 0x1a0   : > { %v465_v43 = vadd.f32 %v771_v42, %v460_v41 }
 0x1a2   : > { %466 = vst [vmem:[%s1276_s10] sm:$0xff] %v465_v43 }
 0x1a3 PF: > { %s1420_s13 = sld [smem:[#allocation19_spill]]  ;;  %s480_s24 = sshll.u32 %s1276_s10, 4  ;;  %s481_s24 = int_to_ptr.vmem [resolvable:$true] %s480_s24 }
 0x1a4   : > { %s1421_s20 = sld [smem:[#allocation30_spill]]  ;;  %s468_s21 = scalar_lea.sflag [#allocation5], %s1247_s29 }
 0x1a9   : > { %s645_s4 = sshll.u32 %s1420_s13, 3 }
 0x1aa   : > { %s1422_s17 = smov %s1421_s20  ;;  %s478_s27 = scalar_lea.hbm %s1421_s20, %s645_s4 }
 0x1ab   : > { %s482_s23 = sshll.u32 %s478_s27, 4  ;;  %s912_s30 = scalar_lea.hbm %s1422_s17, 16  ;;  %s483_s23 = int_to_ptr.hbm [resolvable:$true] %s482_s23 }
 0x1ac   : > { %s906_s15 = sshra.s32 %s483_s23, 4  ;;  %s907_s15 = int_to_ptr.hbm [resolvable:$true] %s906_s15 }
 0x1ad   : > { %s908_s12 = scalar_lea.hbm %s907_s15, 8  ;;  %p913_p3 = scmp.lt.s32.totalorder %s907_s15, %s1422_s17 }
 0x1ae   : > { %p909_p10 = scmp.ne.s32.totalorder %s907_s15, %s908_s12  ;;  %p914_p0 = scmp.lt.s32.totalorder %s912_s30, %s908_s12 }
 0x1b0   : > { %p910_p11 = pnand %p909_p10, %p1205_p12  ;;  %p915_p5 = por %p914_p0, %p913_p3 }
 0x1b2   : > { %p911_p1 = pneg %p910_p11 }
 0x1b4   : > { %p916_p6 = pnand %p915_p5, %p911_p1 }
 0x1b6   : > { %919 = shalt.err (!%p916_p6)
}
 0x1b7   : > { %657 = dma.vmem_to_hbm [thread:$0]  (%p1205_p12), %s481_s24, 128, %s483_s23, %s468_s21  }
 0x1b8 PF: > { %s1423_s29 = sld [smem:[#allocation21_spill]] }
 0x1b9   : > { %s1424_s8 = sld [smem:[#allocation17_spill]] }
 0x1be   : > { %p677_p8 = scmp.ge.s32.totalorder %s1423_s29, 2 }
 0x1bf   : > { %s494_s18 = sand.u32 1, %s1424_s8  }
 0x1c0   : > { %p673_p9 = pnand %p677_p8, %p1214_p13  ;;  %s495_s10 = scalar_lea.sflag [#allocation5], %s494_s18 }
 0x1c2   : > { %p674_p2 = pneg %p673_p9 }
 0x1c4   : > { %977 = dma.done.wait (%p674_p2), %s495_s10, 128  }
 0x1c5   : > { %979 = vsyncadd (%p674_p2), %s495_s10, 4294967168  ;;  %s27_s28 = sadd.s32 1, %s1423_s29   ;;  %s1426_s5 = sld [smem:[#allocation16_spill]] }
 0x1c6   : > { %p24_p4 = scmp.ge.s32.totalorder %s27_s28, 6   ;;  %s1427_s20 = sld [smem:[#allocation24_spill]] }
 0x1c7   : > { %s1428_s25 = sld [smem:[#allocation18_spill]]  ;;  %s1433_s18 = smov %s986_s19 }
 0x1c8   : > { %s1429_s23 = sld [smem:[#allocation25_spill]]  ;;  %s1435_s21 = smov %s998_s22 }
 0x1c9   : > { %s1430_s7 = sld [smem:[#allocation20_spill]]  ;;  %s1437_s24 = smov %s1014_s26 }
 0x1ca   : > { %s1431_s6 = sld [smem:[#allocation22_spill]] }
 0x1cb   : > { %s1432_s27 = sld [smem:[#allocation23_spill]]  ;;  %s1434_s19 = smov %s1426_s5 }
 0x1cc   :  { %26 = sbr.rel (!%p24_p4) target bundleno = 18 (0x12), region = 130 }
 0x1cd   : > { %s1436_s22 = smov %s1428_s25 }
 0x1cf   : > { %s1438_s25 = smov %s1430_s7 }
 0x1d0   : > { %s1439_s26 = smov %s1431_s6 }
 0x1d1   :  { %501 = vsyncpa [#allocation4], 1 }
 0x1d2   :  { %503 = vsyncpa [#allocation4 + $0x1], 1 }
 0x1d3   :  { %504 = vsyncpa [#allocation7], 1 }
 0x1d4   :  { %506 = vsyncpa [#allocation7 + $0x1], 1 }
 0x1d5   :  { %507 = vsyncpa [#allocation10], 1 }
 0x1d6   :  { %509 = vsyncpa [#allocation10 + $0x1], 1 }
 0x1d7   :  { %510 = vsyncpa [#allocation5], 1 }
 0x1d8   :  { %512 = vsyncpa [#allocation5 + $0x1], 1 }

</bundles_post_ra>
